<compile_context>
chip_gen: v6e
topology: v6e:2x2x1
jax: 0.10.0
libtpu: 0.0.40
codegen_flags: <defaults>
</compile_context>

<pallas_src>
import math

import jax
import jax.numpy as jnp
from jax.experimental import pallas as pl
from jax.experimental.pallas import tpu as pltpu


def _ceil_div(a, b):
    return -(-a // b)


def _round_down(v, m):
    return (v // m) * m


def _round_up(v, m):
    return _ceil_div(v, m) * m


def _device_budgets():
    """(output-tile byte budget, scoped-VMEM limit) tuned per TPU generation."""
    phys = None
    try:
        phys = getattr(pltpu.get_tpu_info(), "vmem_capacity_bytes", None)
    except Exception:
        phys = None
    if phys is not None and phys >= (100 << 20):
        # v5e / v6e: 128 MiB physical VMEM -> bigger tiles + raised scoped limit.
        return 12 << 20, 48 << 20
    # v7x (64 MiB physical) or unknown: stay inside the 32 MiB scoped default.
    return 8 << 20, 32 << 20


def _pick_tiles(M, n, C, itemsize, target_bytes, min_grid=4):
    """Pick (tm, tnn): rows per block and expand-reps per block.

    Output blocks are (tm, tnn*C).  Legality: tm % sub == 0 or tm == M, and
    tnn*C % 128 == 0 or tnn == n.  A cdiv grid masks ragged edges, so tiles
    never need to divide M / n exactly (robust for prime-ish sizes).
    """
    sub = 8 * max(1, 4 // itemsize)            # sublane packing multiple
    lane_mult = 128 // math.gcd(C, 128)        # reps needed for 128-lane alignment
    row_bytes = C * itemsize

    # --- rep-axis tile.  Prefer tnn == n: each output row then writes back as
    # one fully contiguous HBM burst.
    if lane_mult >= n or sub * n * row_bytes <= target_bytes:
        tnn = n
    else:
        cap = _round_down(n, lane_mult)
        max_reps = _round_down(max(lane_mult, target_bytes // (sub * row_bytes)),
                               lane_mult)
        min_reps = _round_up(_ceil_div(1024, row_bytes), lane_mult)  # >=1 KiB burst
        tnn = max(lane_mult, min(cap, max_reps))
        tnn = max(tnn, min(cap, min_reps))

    # --- row-axis tile: largest sublane multiple keeping (in + out) block
    # bytes within the budget.
    if M <= sub:
        tm = M
    else:
        budget_rows = target_bytes // max(1, (tnn + 1) * row_bytes)
        tm = max(sub, _round_down(budget_rows, sub))
        tm = min(tm, _round_down(M, sub))

    # --- Megacore: keep enough parallel grid steps (v7x has 2 TensorCores).
    steps = lambda a, b: _ceil_div(M, a) * _ceil_div(n, b)
    while steps(tm, tnn) < min_grid and M > sub and tm > sub:
        tm = max(sub, _round_down(tm // 2, sub))
    while steps(tm, tnn) < min_grid and lane_mult < n and tnn > lane_mult:
        new_tnn = max(lane_mult, _round_down(tnn // 2, lane_mult))
        if new_tnn == tnn:
            break
        tnn = new_tnn
    return tm, tnn


def _pick_unit_reps(C, reps, tm, itemsize):
    """Reps per chunked store.  Always divides `reps`; chunk width 128-aligned."""
    if reps <= 1:
        return 1
    lane_mult = 128 // math.gcd(C, 128)
    if reps % lane_mult != 0:
        return reps        # can't keep chunks aligned -> single full-block store
    unit = lane_mult
    # Grow (staying a divisor of reps) so the store-loop trip count is modest
    # while the live repeated unit stays a few vregs (<=2048 lanes, <=128 KiB).
    while (reps % (unit * 2) == 0
           and (unit * 2) * C <= 2048
           and tm * (unit * 2) * C * itemsize <= 128 * 1024):
        unit *= 2
    return unit


def _make_kernel(C, reps, unit_reps):
    """Kernel storing `reps` lane-wise copies of the (tm, C) input tile."""
    chunks = reps // unit_reps
    unit_w = unit_reps * C

    def kernel(x_ref, o_ref):
        x = x_ref[...]
        unit = x if unit_reps == 1 else jnp.tile(x, (1, unit_reps))
        if chunks == 1:
            o_ref[...] = unit
        elif chunks <= 8:
            for k in range(chunks):                         # static offsets
                o_ref[:, pl.ds(k * unit_w, unit_w)] = unit
        else:
            def body(k, carry):
                off = pl.multiple_of(k * unit_w, 128)       # unit_w % 128 == 0 here
                o_ref[:, pl.ds(off, unit_w)] = unit
                return carry
            jax.lax.fori_loop(0, chunks, body, 0)

    return kernel


def expander(x, n=None, dim=1):
    """Pallas equivalent of jactorch Expander(dim).forward(x, n)."""
    if dim < 0:
        dim += x.ndim
    shape = x.shape
    if dim == 0:
        assert n is not None, "Expander(dim=0) requires an explicit n"
    elif n is None:
        n = shape[dim]                          # torch: n = input.size(self.dim)
    n = int(n)

    lead = shape[: dim + 1]
    trail = shape[dim + 1:]
    M = int(math.prod(lead)) if lead else 1
    C = int(math.prod(trail)) if trail else 1
    x2 = x.reshape(M, C)

    itemsize = jnp.dtype(x.dtype).itemsize
    target_bytes, vmem_limit = _device_budgets()
    tm, tnn = _pick_tiles(M, n, C, itemsize, target_bytes)
    kernel = _make_kernel(C, tnn, _pick_unit_reps(C, tnn, tm, itemsize))

    grid = (pl.cdiv(M, tm), pl.cdiv(n, tnn))
    cost = pl.CostEstimate(flops=0, transcendentals=0,
                           bytes_accessed=(M * C + M * n * C) * itemsize)
    params = pltpu.CompilerParams(dimension_semantics=("parallel", "parallel"),
                                  vmem_limit_bytes=vmem_limit)

    def run(out_spec):
        return pl.pallas_call(
            kernel,
            out_shape=jax.ShapeDtypeStruct((M, n * C), x.dtype),
            grid=grid,
            in_specs=[pl.BlockSpec((tm, C), lambda i, j: (i, 0))],
            out_specs=out_spec,
            compiler_params=params,
            cost_estimate=cost,
        )(x2)

    try:
        # Triple-buffer the (DMA-dominated) output writeback; tile budgets were
        # chosen so 3x output + 2x input buffers fit within vmem_limit.
        out_flat = run(pl.BlockSpec((tm, tnn * C), lambda i, j: (i, j),
                                    pipeline_mode=pl.Buffered(3)))
    except Exception:
        out_flat = run(pl.BlockSpec((tm, tnn * C), lambda i, j: (i, j)))

    # Free reshape: (M, n*C) is contiguous-identical to (*lead, n, *trail).
    return out_flat.reshape(*lead, n, *trail)


class Expander:
    """Mirror of the torch module's interface."""

    def __init__(self, dim):
        self.dim = dim

    def __call__(self, input, n=None):
        return expander(input, n=n, dim=self.dim)

    def get_output_dim(self, input_dim):
        return input_dim


if __name__ == "__main__":
    key = jax.random.PRNGKey(0)
    B, N, C = 2, 8, 32
    x = jax.random.normal(key, (B, N, C), dtype=jnp.float32)

    # Default n (= x.shape[dim]) with dim=1, like the torch module.
    exp1 = Expander(dim=1)
    out = jax.block_until_ready(exp1(x))                      # (B, N, N, C)
    ref = jnp.broadcast_to(x[:, :, None, :], (B, N, N, C))
    assert out.shape == (B, N, N, C) and out.dtype == x.dtype
    assert jnp.array_equal(out, ref), "mismatch vs. reference broadcast"

    # Explicit n != N (exercises the chunked, 128-lane-aligned store loop).
    n2 = 512
    out2 = jax.block_until_ready(exp1(x, n=n2))
    ref2 = jnp.broadcast_to(x[:, :, None, :], (B, N, n2, C))
    assert out2.shape == (B, N, n2, C)
    assert jnp.array_equal(out2, ref2)

    # bf16 path (sublane-packed tiling).
    xb = x.astype(jnp.bfloat16)
    out3 = jax.block_until_ready(exp1(xb))
    assert out3.dtype == jnp.bfloat16
    assert jnp.array_equal(out3, jnp.broadcast_to(xb[:, :, None, :], (B, N, N, C)))

    # Non-divisible M / n and non-128-aligned trailing dim (masked edge tiles).
    x4 = jax.random.normal(key, (3, 5, 24), dtype=jnp.float32)
    out4 = jax.block_until_ready(exp1(x4))
    assert jnp.array_equal(out4, jnp.broadcast_to(x4[:, :, None, :], (3, 5, 5, 24)))

    # dim=0 requires an explicit n (matches the torch assert).
    exp0 = Expander(dim=0)
    x5 = jax.random.normal(key, (4, 6), dtype=jnp.float32)
    out5 = jax.block_until_ready(exp0(x5, n=3))
    assert jnp.array_equal(out5, jnp.broadcast_to(x5[:, None, :], (4, 3, 6)))

    print("KERNEL_OK")
</pallas_src>

<mosaic_0001>
module attributes {stable_mosaic.version = 11 : i64} {
  func.func @kernel(%arg0: i32, %arg1: i32, %arg2: memref<8x32xf32, #tpu.memory_space<vmem>>, %arg3: memref<8x128xf32, #tpu.memory_space<vmem>>) attributes {dimension_semantics = [#tpu.dimension_semantics<parallel>, #tpu.dimension_semantics<parallel>], iteration_bounds = array<i64: 2, 2>, scalar_prefetch = 0 : i64, scratch_operands = 0 : i64, tpu.core_type = #tpu.core_type<tc>, window_params = [{transform_indices = @transform_0, window_bounds = array<i64: 8, 32>}, {transform_indices = @transform_1, window_bounds = array<i64: 8, 128>}]} {
    %c0 = arith.constant 0 : index
    %c0_0 = arith.constant 0 : index
    %0 = vector.load %arg2[%c0, %c0_0] : memref<8x32xf32, #tpu.memory_space<vmem>>, vector<8x32xf32>
    %1 = tpu.concatenate %0, %0, %0, %0 in 1 : vector<8x32xf32>, vector<8x32xf32>, vector<8x32xf32>, vector<8x32xf32> -> vector<8x128xf32>
    %c0_1 = arith.constant 0 : index
    %c0_2 = arith.constant 0 : index
    %2 = vector.load %arg3[%c0_1, %c0_2] : memref<8x128xf32, #tpu.memory_space<vmem>>, vector<8x128xf32>
    tpu.vector_store %arg3[%c0_1, %c0_2], %1 {strides = array<i32>} : memref<8x128xf32, #tpu.memory_space<vmem>>, vector<8x128xf32>,
    return
  }
  func.func @transform_0(%arg0: i32, %arg1: i32) -> (i32, i32) {
    %c0_i32 = arith.constant 0 : i32
    %c0_i32_0 = arith.constant 0 : i32
    return %arg0, %c0_i32 : i32, i32
  }
  func.func @transform_1(%arg0: i32, %arg1: i32) -> (i32, i32) {
    %c0_i32 = arith.constant 0 : i32
    return %arg0, %arg1 : i32, i32
  }
}

</mosaic_0001>

<bundles_post_ra>
// kernel: tpu_custom_call.1
= control target key start
LH: loop header
LB: loop body
LE: loop exit
PB: predicated region body
PF: predicated region fallthrough
CT: control target
= control target key end

     0   :  { %6 = vsyncpa [#allocation3], 0  ;;  %s733_s0 = inlined_call_operand.hbm [shape: f32[16,32], index: 0, kind: input, shape index: {}]   ;;  %s734_s1 = inlined_call_operand.hbm [shape: f32[16,256], index: 1, kind: output, shape index: {}]  }
   0x1   :  { %8 = vsyncpa [#allocation3 + $0x1], 0 }
   0x2   :  { %9 = vsyncpa [#allocation4], 0 }
   0x3   :  { %11 = vsyncpa [#allocation4 + $0x1], 0  ;;  %s547_s6 = smov 0   ;;  %s549_s7 = smov 0  }
   0x4   :  { %s551_s8 = smov 0   ;;  %s553_s9 = smov 0  }
   0x5   :  { %s555_s10 = smov 0   ;;  %s557_s11 = smov 0  }
   0x6   :  { %s559_s12 = smov 0   ;;  %s561_s13 = smov 0  }
   0x7   :  { %s563_s14 = smov 0   ;;  %s565_s15 = smov 0  }
   0x8   :  { %s567_s16 = smov 0  }
   0x9 LB: > { %s263_s17 = sadd.s32 4294967295, %s530_s16   ;;  %s264_s18 = sadd.s32 4294967294, %s530_s16   ;;  %s530_s16 = sphi %s567_s16, %s17_s16   ;;  %s526_s15 = sphi %s565_s15, %s750_s15   ;;  %s522_s14 = sphi %s563_s14, %s749_s14   ;;  %s518_s13 = sphi %s561_s13, %s748_s13   ;;  %s514_s12 = sphi %s559_s12, %s747_s12   ;;  %s510_s11 = sphi %s557_s11, %s746_s11   ;;  %s506_s10 = sphi %s555_s10, %s745_s10   ;;  %s502_s9 = sphi %s553_s9, %s744_s9   ;;  %s498_s8 = sphi %s551_s8, %s743_s8   ;;  %s494_s7 = sphi %s549_s7, %s742_s7   ;;  %s490_s6 = sphi %s547_s6, %s741_s6  }
   0xa   : > { %s26_s19 = sadd.s32 1, %s522_s14  ;;  %s29_s20 = sadd.s32 1, %s526_s15 }
   0xb   : > { %p27_p0 = scmp.ge.s32.totalorder %s26_s19, 2  ;;  %s36_s21 = sadd.s32 1, %s510_s11 }
   0xc   : > { %p43_p1 = scmp.ne.s32.totalorder %s510_s11, %s506_s10  ;;  %p44_p2 = scmp.eq.s32.totalorder %s530_s16, 0 }
   0xd   : > { %s752_s19 = smov (%p27_p0, %s26_s19), 0  ;;  %s754_s20 = smov (!%p27_p0, %s29_s20), %s526_s15 }
   0xe   : > { %p611_p3 = por %p44_p2, %p43_p1  ;;  %p49_p4 = scmp.ne.s32.totalorder %s506_s10, %s502_s9 }
   0xf   : > { %p31_p5 = scmp.ge.s32.totalorder %s754_s20, 2  ;;  %p50_p6 = scmp.eq.s32.totalorder %s263_s17, 0 }
  0x10   : > { %s60_s23 = ssub.s32 %s522_s14, %s752_s19  ;;  %s64_s24 = sadd.s32 1, %s498_s8 }
  0x11   : > { %s756_s20 = smov (%p31_p5, %s754_s20), 0  ;;  %p621_p7 = por %p50_p6, %p49_p4 }
  0x12   : > { %p74_p8 = scmp.ne.s32.totalorder %s498_s8, %s494_s7  ;;  %s33_s26 = ssub.s32 %s526_s15, %s756_s20 }
  0x13   : > { %p75_p9 = scmp.eq.s32.totalorder %s263_s17, 3  ;;  %p34_p10 = scmp.eq.s32.totalorder %s33_s26, 0 }
  0x14   : > { %s61_s27 = sor.u32 %s60_s23, %s33_s26  ;;  %p80_p13 = scmp.ne.s32.totalorder %s494_s7, %s490_s6 }
  0x15   : > { %p62_p11 = scmp.eq.s32.totalorder %s61_s27, 0  ;;  %p629_p12 = por %p75_p9, %p74_p8 }
  0x16   : > { %s634_s29 = scalar_select %p34_p10, %s510_s11, %s36_s21  }
  0x17   : > { %s637_s30 = scalar_select %p62_p11, %s498_s8, %s64_s24  }
  0x18   : > { %p81_p0 = scmp.eq.s32.totalorder %s264_s18, 3  ;;  %p289_p1 = scmp.lt.s32.totalorder %s530_s16, 4 }
  0x19   : > { %s101_s3 = sand.u32 1, %s510_s11   ;;  %s268_s5 = sshll.u32 %s526_s15, 7 }
  0x1a   : > { %p642_p2 = por %p81_p0, %p80_p13  ;;  %s267_s4 = sshll.u32 %s101_s3, 3 }
  0x1b   : > { %s110_s23 = scalar_lea.hbm %s733_s0, %s268_s5  ;;  %s105_s26 = scalar_lea.vmem [#allocation2], %s267_s4 }
  0x1c   : > { %s738_s2 = scalar_select %p642_p2, 1, 0 }
  0x1d   : > { %s112_s27 = sshll.u32 %s105_s26, 4  ;;  %p653_p4 = pnand %p289_p1, %p611_p3  ;;  %s113_s27 = int_to_ptr.vmem [resolvable:$true] %s112_s27 }
  0x1e   : > { %p269_p5 = scmp.ge.s32.totalorder %s530_s16, 1  ;;  %p117_p6 = scmp.lt.s32.totalorder %s530_s16, 5 }
  0x1f   : > { %s102_s18 = scalar_lea.sflag [#allocation3], %s101_s3  ;;  %p384_p8 = pneg %p653_p4 }
  0x20   : > { %s395_s24 = scalar_lea.vmem %s113_s27, 128  ;;  %s532_s9 = smov [#allocation2]  }
  0x21   : > { %p396_p9 = scmp.ne.s32.totalorder %s113_s27, %s395_s24  ;;  %s400_s5 = sshll.u32 %s532_s9, 4  ;;  %s401_s5 = int_to_ptr.vmem [resolvable:$false] %s400_s5 }
  0x22   : > { %s402_s4 = scalar_lea.vmem %s401_s5, 256  ;;  %p403_p13 = scmp.lt.s32.totalorder %s113_s27, %s401_s5 }
  0x23   : > { %p398_p10 = pnand %p396_p9, %p384_p8  ;;  %p404_p0 = scmp.lt.s32.totalorder %s402_s4, %s395_s24 }
  0x25   : > { %p399_p11 = pneg %p398_p10  ;;  %p405_p3 = por %p404_p0, %p403_p13 }
  0x27   : > { %p406_p1 = pnand %p405_p3, %p399_p11 }
  0x29   : > { %409 = shalt.err (!%p406_p1)
}
  0x2a   : > { %284 = dma.hbm_to_vmem [thread:$0]  (!%p653_p4), %s110_s23, 128, %s113_s27, %s102_s18  }
  0x2b   : > { %p118_p2 = pnand %p269_p5, %p117_p6 }
  0x2c   : > { %s123_s22 = sand.u32 (!%p118_p2), 1, %s506_s10  }
  0x2d   : > { %121 = sbr.rel (%p118_p2) target bundleno = 186 (0xba), region = 24  ;;  %s270_s3 = sshll.u32 (!%p118_p2), %s123_s22, 3 }
  0x2e   : > { %s124_s17 = scalar_lea.sflag (!%p118_p2), [#allocation3], %s123_s22  ;;  %s127_s26 = scalar_lea.vmem (!%p118_p2), [#allocation2], %s270_s3 }
  0x32   : > { %481 = dma.done.wait (%p621_p7), %s124_s17, 128  }
  0x33   : > { %483 = vsyncadd (%p621_p7), %s124_s17, 4294967168  ;;  %v146_v0 = vld [vmem:[%s127_s26] sm:$0xff]  ;;  %s533_s23 = smov 32   ;;  %s534_s27 = smov 96   ;;  %vm157_vm0 = vcmask 261120   ;;  %vm159_vm1 = vcmask 523264  }
  0x34   : > { %148 = vrot.lane.b32.xlu0 %v146_v0, %s533_s23  ;;  %154 = vrot.lane.b32.xlu1 %v146_v0, %s534_s27  ;;  %s535_s21 = smov 64   ;;  %s143_s18 = sand.u32 1, %s494_s7   ;;  %vm161_vm2 = vcmask 785408  }
  0x35   : > { %s271_s24 = sshll.u32 %s143_s18, 3  ;;  %s273_s9 = sshll.u32 %s518_s13, 1 }
  0x36   : > { %s176_s5 = sadd.s32 %s514_s12, %s273_s9  ;;  %s145_s4 = scalar_lea.vmem [#allocation5], %s271_s24 }
  0x37   : > { %s274_s25 = sshll.u32 %s176_s5, 7  ;;  %s180_s22 = sshll.u32 %s145_s4, 4  ;;  %s181_s22 = int_to_ptr.vmem [resolvable:$true] %s180_s22 }
  0x38   : > { %151 = vrot.lane.b32.xlu0 %v146_v0, %s535_s21  ;;  %s678_s26 = scalar_lea.hbm %s734_s1, %s274_s25  ;;  %s165_s12 = scalar_lea.sflag [#allocation4], %s143_s18 }
  0x39   : > { %s410_s13 = scalar_lea.vmem %s181_s22, 128  ;;  %s536_s23 = smov [#allocation5]  }
  0x3a   : > { %p411_p7 = scmp.ne.s32.totalorder %s181_s22, %s410_s13  ;;  %s414_s27 = sshll.u32 %s536_s23, 4  ;;  %s415_s27 = int_to_ptr.vmem [resolvable:$false] %s414_s27 }
  0x3b   : > { %s416_s21 = scalar_lea.vmem %s415_s27, 256  ;;  %p417_p5 = scmp.lt.s32.totalorder %s181_s22, %s415_s27 }
  0x3c   : > { %p412_p2 = pnand %p411_p7, %p629_p12  ;;  %p418_p6 = scmp.lt.s32.totalorder %s416_s21, %s410_s13 }
  0x3e   : > { %p413_p4 = pneg %p412_p2  ;;  %p419_p8 = por %p418_p6, %p417_p5 }
  0x40   : > { %p420_p9 = pnand %p419_p8, %p413_p4 }
  0xa6   : > { %v149_v1 = vpop.permute.xlu0 %148  ;;  %v155_v2 = vpop.permute.xlu1 %154 }
  0xa7   : > { %v158_v3 = vsel %vm157_vm0, %v146_v0, %v149_v1 }
  0xaa   : > { %v152_v4 = vpop.permute.xlu0 %151 }
  0xab   : > { %v160_v5 = vsel %vm159_vm1, %v158_v3, %v152_v4 }
  0xac   : > { %v162_v6 = vsel %vm161_vm2, %v160_v5, %v155_v2 }
  0xad   : > { %163 = vst [vmem:[%s145_s4] sm:$0xff] %v162_v6 }
  0xae   : > { %423 = shalt.err (!%p420_p9)
}
  0xaf   : > { %s424_s24 = scalar_lea.hbm %s678_s26, 128  ;;  %s428_s5 = scalar_lea.hbm %s734_s1, 512 }
  0xb0   : > { %p425_p10 = scmp.ne.s32.totalorder %s678_s26, %s424_s24  ;;  %p429_p0 = scmp.lt.s32.totalorder %s678_s26, %s734_s1 }
  0xb1   : > { %p430_p3 = scmp.lt.s32.totalorder %s428_s5, %s424_s24 }
  0xb2   : > { %p426_p11 = pnand %p425_p10, %p629_p12 }
  0xb3   : > { %p431_p1 = por %p430_p3, %p429_p0 }
  0xb4   : > { %p427_p13 = pneg %p426_p11 }
  0xb6   : > { %p432_p7 = pnand %p431_p1, %p427_p13 }
  0xb8   : > { %435 = shalt.err (!%p432_p7)
}
  0xb9   : > { %279 = dma.vmem_to_hbm [thread:$0]  (%p629_p12), %s181_s22, 128, %s678_s26, %s165_s12  }
  0xba PF: > { %p290_p2 = scmp.ge.s32.totalorder %s530_s16, 2  ;;  %s192_s3 = sand.u32 1, %s490_s6  }
  0xbb   : > { %p740_p4 = scmp.ne.s32.totalorder %s738_s2, 0  ;;  %s193_s17 = scalar_lea.sflag [#allocation4], %s192_s3 }
  0xbd   : > { %p286_p5 = pnand %p290_p2, %p740_p4 }
  0xbf   : > { %p287_p6 = pneg %p286_p5 }
  0xc1   : > { %485 = dma.done.wait (%p287_p6), %s193_s17, 128  }
  0xc2   : > { %487 = vsyncadd (%p287_p6), %s193_s17, 4294967168  ;;  %s17_s16 = sadd.s32 1, %s530_s16   ;;  %s741_s6 = smov %s494_s7 }
  0xc3   : > { %p14_p8 = scmp.ge.s32.totalorder %s17_s16, 6   ;;  %s742_s7 = smov %s498_s8 }
  0xc4   : > { %s743_s8 = smov %s637_s30  ;;  %s744_s9 = smov %s506_s10 }
  0xc5   : > { %s745_s10 = smov %s510_s11  ;;  %s746_s11 = smov %s634_s29 }
  0xc6   : > { %s747_s12 = smov %s522_s14  ;;  %s748_s13 = smov %s526_s15 }
  0xc7   : > { %s749_s14 = smov %s752_s19  ;;  %s750_s15 = smov %s756_s20 }
  0xc8   :  { %16 = sbr.rel (!%p14_p8) target bundleno = 9 (0x9), region = 69 }
  0xcd   :  { %198 = vsyncpa [#allocation3], 1 }
  0xce   :  { %200 = vsyncpa [#allocation3 + $0x1], 1 }
  0xcf   :  { %201 = vsyncpa [#allocation4], 1 }
  0xd0   :  { %203 = vsyncpa [#allocation4 + $0x1], 1 }

</bundles_post_ra>
